<compile_context>
chip_gen: v5e
topology: v5e:2x2
jax: 0.10.0
libtpu: 0.0.40
codegen_flags: <defaults>
</compile_context>

<pallas_src>
import functools

import jax
import jax.numpy as jnp
from jax.experimental import pallas as pl
from jax.experimental.pallas import tpu as pltpu


def _round_up(n: int, m: int) -> int:
    return ((n + m - 1) // m) * m


def _cdiv(a: int, b: int) -> int:
    return (a + b - 1) // b


def _auto_mxu_dtype(d: int, h: int):
    # HBM-bound at small/medium conditioners: stay f32 (matches the fp32
    # PyTorch module, and bf16 operands would buy ~no wall-clock).  Switch to
    # bf16 (f32 accumulation) only when the weights are big enough to matter
    # for VMEM/HBM traffic.
    return jnp.float32 if d * h < (1 << 20) else jnp.bfloat16


def _resident_spec(block_shape):
    """BlockSpec for a block that is identical for every grid step.

    Constant index_map -> fetched once, VMEM-resident.  Single buffering
    (pl.Buffered(1)) avoids a dead second buffer for a block that never
    changes (matters for large D*H on v7x's 64 MiB VMEM and against v5e's
    16 MiB default scoped limit).  Falls back gracefully on jax versions
    without the pipeline_mode kwarg.
    """
    idx = lambda i: (0, 0)
    try:
        return pl.BlockSpec(block_shape, idx, pipeline_mode=pl.Buffered(1))
    except (AttributeError, TypeError, ValueError):
        return pl.BlockSpec(block_shape, idx)


def _choose_tile_b(batch: int, row_bytes: int, tile_b):
    """Batch-tile heuristic for a memory-bound kernel.

    Make each x block a few MiB so the ~0.35us per-grid-step overhead is
    amortized (tile sweeps show large blocks recover 85%+ of HBM BW), but keep
    >= ~8 grid steps when the batch allows it so both v7x TensorCores get
    >= ~4 tiles each.
    """
    if tile_b is None:
        target_bytes = 4 << 20                      # ~4 MiB of x per block
        by_bytes = max(8, target_bytes // max(1, row_bytes))
        by_grid = max(8, _cdiv(batch, 8))           # keep >= ~8 grid steps
        tile_b = min(by_bytes, by_grid)
    tile_b = min(tile_b, _round_up(batch, 8))
    return max(8, _round_up(tile_b, 8))


def _vmem_limit_bytes(x_block_bytes: int, out_block_bytes: int,
                      weight_bytes: int) -> int:
    # Double-buffered activation blocks + resident weights + headroom for the
    # f32 intermediates / compiler scratch.
    need = 2 * x_block_bytes + 2 * out_block_bytes + weight_bytes
    need = need + need // 2 + (8 << 20)
    # Raise the default scoped limit (16 MiB v5e / 32 MiB v6e+v7x) but stay
    # within v7x's 64 MiB physical VMEM.
    return int(min(max(need, 32 << 20), 64 << 20))


def prepare_coupling_params(w1, b1, w2, b2, *, mxu_dtype=jnp.float32):
    """Cast/reshape conditioner params ONCE (hoist out of the per-call path).

    w1: (D, H), b1: (H,), w2: (H, D), b2: (D,).  Returns weights in
    `mxu_dtype` and biases as f32 rows (1, H) / (1, D).  Idempotent: feeding
    already-prepared params back is a no-op under jit.
    """
    w1c = jnp.asarray(w1, mxu_dtype)
    w2c = jnp.asarray(w2, mxu_dtype)
    b1r = jnp.asarray(b1, jnp.float32).reshape(1, w1.shape[-1])
    b2r = jnp.asarray(b2, jnp.float32).reshape(1, w2.shape[-1])
    return w1c, b1r, w2c, b2r


def _mlp_shift(v, w1_ref, b1_ref, w2_ref, b2_ref, mxu_dtype):
    # MXU matmuls (f32 accumulation) + f32 bias adds (VPU) + f32 tanh (EUP).
    h = jnp.tanh(
        jnp.dot(v.astype(mxu_dtype), w1_ref[...],
                preferred_element_type=jnp.float32) + b1_ref[...])
    return jnp.dot(h.astype(mxu_dtype), w2_ref[...],
                   preferred_element_type=jnp.float32) + b2_ref[...]


# ----------------------------- single layer ---------------------------------


def _coupling_kernel(x_ref, w1_ref, b1_ref, w2_ref, b2_ref, out_ref, *,
                     update_q: bool, d: int, mxu_dtype, half_write: bool):
    # Free static split of the (tile_b, 2D) VMEM block.
    q = x_ref[:, :d]
    p = x_ref[:, d:]
    cond_in = p if update_q else q
    target = q if update_q else p

    shift = _mlp_shift(cond_in, w1_ref, b1_ref, w2_ref, b2_ref, mxu_dtype)
    updated = (target.astype(jnp.float32) + shift).astype(out_ref.dtype)

    if half_write:
        # Output block covers only the updated half; the pass-through half is
        # preserved by input/output aliasing and never re-written to HBM.
        out_ref[...] = updated
    else:
        # TODO(synk): pad D to a multiple of 128 upstream so the lane-aligned
        # half-write path always applies (avoids masked vst.msk stores and the
        # redundant pass-through write below).
        if update_q:
            out_ref[:, :d] = updated
            out_ref[:, d:] = p
        else:
            out_ref[:, :d] = q
            out_ref[:, d:] = updated


def symplectic_coupling_forward(x, w1, b1, w2, b2, *, update_q: bool = True,
                                tile_b: int | None = None, mxu_dtype=None):
    """Forward pass of SymplecticCouplingLayer.  x: [B, 2*D] -> [B, 2*D].

    NOTE on donation: the fast (D % 128 == 0) path aliases the output onto x
    (input_output_aliases={0: 0}) and only writes the UPDATED half back to
    HBM.  To realize that saving, make x donatable at the jit boundary, e.g.
    jax.jit(symplectic_coupling_forward, donate_argnums=(0,), ...); a
    non-donated x is still correct (XLA inserts a defensive copy).
    """
    B, two_d = x.shape
    assert two_d % 2 == 0
    D = two_d // 2
    H = w1.shape[-1]
    assert w1.shape == (D, H) and w2.shape == (H, D)

    if mxu_dtype is None:
        mxu_dtype = _auto_mxu_dtype(D, H)
    w1c, b1r, w2c, b2r = prepare_coupling_params(w1, b1, w2, b2,
                                                 mxu_dtype=mxu_dtype)

    itemsize = jnp.dtype(x.dtype).itemsize
    tile_b = _choose_tile_b(B, two_d * itemsize, tile_b)
    grid = (_cdiv(B, tile_b),)

    half_write = (D % 128 == 0)
    out_cols = D if half_write else two_d

    w_bytes = 2 * D * H * jnp.dtype(mxu_dtype).itemsize + (H + D) * 4
    vmem_limit = _vmem_limit_bytes(tile_b * two_d * itemsize,
                                   tile_b * out_cols * itemsize, w_bytes)

    kernel = functools.partial(_coupling_kernel, update_q=update_q, d=D,
                               mxu_dtype=mxu_dtype, half_write=half_write)

    in_specs = [
        pl.BlockSpec((tile_b, two_d), lambda i: (i, 0)),   # x, batch-tiled
        _resident_spec((D, H)),                             # W1 (resident)
        _resident_spec((1, H)),                             # b1 (resident)
        _resident_spec((H, D)),                             # W2 (resident)
        _resident_spec((1, D)),                             # b2 (resident)
    ]

    if half_write:
        upd_col = 0 if update_q else 1   # block-column of the updated half
        out_specs = pl.BlockSpec((tile_b, D), lambda i: (i, upd_col))
        io_alias = {0: 0}                # pass-through half kept via aliasing
    else:
        out_specs = pl.BlockSpec((tile_b, two_d), lambda i: (i, 0))
        io_alias = {}

    cost = pl.CostEstimate(
        flops=int(4 * B * D * H),
        transcendentals=int(B * H),
        bytes_accessed=int(B * two_d * itemsize + B * out_cols * itemsize
                           + w_bytes))

    return pl.pallas_call(
        kernel,
        grid=grid,
        in_specs=in_specs,
        out_specs=out_specs,
        out_shape=jax.ShapeDtypeStruct((B, two_d), x.dtype),
        input_output_aliases=io_alias,
        cost_estimate=cost,
        compiler_params=pltpu.CompilerParams(
            dimension_semantics=("parallel",),   # shard batch axis (v7x 2xTC)
            vmem_limit_bytes=vmem_limit),
    )(x, w1c, b1r, w2c, b2r)


# --------------------------- fused layer pair --------------------------------


def _coupling_pair_kernel(x_ref, w1a, b1a, w2a, b2a, w1b, b1b, w2b, b2b,
                          out_ref, *, d: int, mxu_dtype, first_update_q: bool):
    q = x_ref[:, :d].astype(jnp.float32)
    p = x_ref[:, d:].astype(jnp.float32)
    if first_update_q:
        q = q + _mlp_shift(p, w1a, b1a, w2a, b2a, mxu_dtype)
        p = p + _mlp_shift(q, w1b, b1b, w2b, b2b, mxu_dtype)
    else:
        p = p + _mlp_shift(q, w1a, b1a, w2a, b2a, mxu_dtype)
        q = q + _mlp_shift(p, w1b, b1b, w2b, b2b, mxu_dtype)
    out_ref[:, :d] = q.astype(out_ref.dtype)
    out_ref[:, d:] = p.astype(out_ref.dtype)


def symplectic_coupling_pair_forward(x, params_first, params_second, *,
                                     first_update_q: bool = True,
                                     tile_b: int | None = None,
                                     mxu_dtype=None):
    """Two alternating coupling layers fused into one kernel.

    Equivalent to applying the layer with `params_first`
    (update_q=first_update_q) and then with `params_second`
    (update_q=not first_update_q), but x makes exactly one HBM round trip
    (~2x less activation traffic per fused pair on v5e/v6e/v7x).
    """
    B, two_d = x.shape
    assert two_d % 2 == 0
    D = two_d // 2
    w1a, b1a, w2a, b2a = params_first
    w1b, b1b, w2b, b2b = params_second
    Ha, Hb = w1a.shape[-1], w1b.shape[-1]
    assert w1a.shape == (D, Ha) and w2a.shape == (Ha, D)
    assert w1b.shape == (D, Hb) and w2b.shape == (Hb, D)

    if mxu_dtype is None:
        mxu_dtype = _auto_mxu_dtype(D, max(Ha, Hb))
    pa = prepare_coupling_params(w1a, b1a, w2a, b2a, mxu_dtype=mxu_dtype)
    pb = prepare_coupling_params(w1b, b1b, w2b, b2b, mxu_dtype=mxu_dtype)

    itemsize = jnp.dtype(x.dtype).itemsize
    tile_b = _choose_tile_b(B, two_d * itemsize, tile_b)
    grid = (_cdiv(B, tile_b),)

    w_bytes = (2 * D * (Ha + Hb) * jnp.dtype(mxu_dtype).itemsize
               + (Ha + Hb + 2 * D) * 4)
    vmem_limit = _vmem_limit_bytes(tile_b * two_d * itemsize,
                                   tile_b * two_d * itemsize, w_bytes)

    kernel = functools.partial(_coupling_pair_kernel, d=D, mxu_dtype=mxu_dtype,
                               first_update_q=first_update_q)
    in_specs = [pl.BlockSpec((tile_b, two_d), lambda i: (i, 0)),
                _resident_spec((D, Ha)), _resident_spec((1, Ha)),
                _resident_spec((Ha, D)), _resident_spec((1, D)),
                _resident_spec((D, Hb)), _resident_spec((1, Hb)),
                _resident_spec((Hb, D)), _resident_spec((1, D))]

    cost = pl.CostEstimate(
        flops=int(4 * B * D * (Ha + Hb)),
        transcendentals=int(B * (Ha + Hb)),
        bytes_accessed=int(2 * B * two_d * itemsize + w_bytes))

    return pl.pallas_call(
        kernel,
        grid=grid,
        in_specs=in_specs,
        out_specs=pl.BlockSpec((tile_b, two_d), lambda i: (i, 0)),
        out_shape=jax.ShapeDtypeStruct((B, two_d), x.dtype),
        cost_estimate=cost,
        compiler_params=pltpu.CompilerParams(
            dimension_semantics=("parallel",),
            vmem_limit_bytes=vmem_limit),
    )(x, *pa, *pb)


# --------------------------------- demo --------------------------------------


def _reference(x, w1, b1, w2, b2, update_q=True):
    D = x.shape[-1] // 2
    q, p = x[:, :D], x[:, D:]
    shift = jnp.tanh((p if update_q else q) @ w1 + b1) @ w2 + b2
    if update_q:
        q = q + shift
    else:
        p = p + shift
    return jnp.concatenate([q, p], axis=-1)


def _make_params(key, d, h):
    k1, k2, k3, k4 = jax.random.split(key, 4)
    lim1 = 1.0 / jnp.sqrt(jnp.float32(d))
    lim2 = 1.0 / jnp.sqrt(jnp.float32(h))
    w1 = jax.random.uniform(k1, (d, h), jnp.float32, -lim1, lim1)
    b1 = jax.random.uniform(k2, (h,), jnp.float32, -lim1, lim1)
    w2 = jax.random.uniform(k3, (h, d), jnp.float32, -lim2, lim2)
    b2 = jax.random.uniform(k4, (d,), jnp.float32, -lim2, lim2)
    return w1, b1, w2, b2


if __name__ == "__main__":
    key = jax.random.PRNGKey(0)
    kx, kx2, kp1, kp2, kp3 = jax.random.split(key, 5)

    # Tolerance note: both paths compute in f32, but TPU MXU f32 matmuls and
    # the XLA-HLO reference may use different bf16-pass emulation, so we allow
    # ~1e-2 absolute slack on values of O(1).  The pass-through half must be
    # bit-exact (aliasing semantics), which we check with array_equal.
    TOL = dict(atol=1e-2, rtol=1e-2)

    # --- lane-aligned (half-write + aliasing) path: D % 128 == 0 -------------
    B, D, H = 24, 128, 128
    x = jax.random.normal(kx, (B, 2 * D), dtype=jnp.float32)
    w1, b1, w2, b2 = _make_params(kp1, D, H)

    for update_q in (True, False):
        ref = _reference(x, w1, b1, w2, b2, update_q=update_q)
        out = jax.block_until_ready(
            symplectic_coupling_forward(x, w1, b1, w2, b2, update_q=update_q))
        assert out.shape == (B, 2 * D)
        assert jnp.allclose(out, ref, **TOL), "half-write path mismatch"
        # Pass-through half preserved exactly (non-donated input).
        if update_q:
            assert jnp.array_equal(out[:, D:], x[:, D:])
        else:
            assert jnp.array_equal(out[:, :D], x[:, :D])

    # Ragged batch (B % tile_b != 0) with the aliased half-write path.
    xr = x[:20]
    refr = _reference(xr, w1, b1, w2, b2, update_q=True)
    outr = jax.block_until_ready(
        symplectic_coupling_forward(xr, w1, b1, w2, b2, update_q=True,
                                    tile_b=8))
    assert jnp.allclose(outr, refr, **TOL), "ragged batch mismatch"
    assert jnp.array_equal(outr[:, D:], xr[:, D:])

    # Donated input: the intended fast path (untouched half never moves).
    fwd_donated = jax.jit(symplectic_coupling_forward,
                          static_argnames=("update_q", "tile_b", "mxu_dtype"),
                          donate_argnums=(0,))
    x_copy = x + 0.0
    outd = jax.block_until_ready(
        fwd_donated(x_copy, w1, b1, w2, b2, update_q=True))
    assert jnp.allclose(outd, _reference(x, w1, b1, w2, b2, update_q=True),
                        **TOL), "donated path mismatch"

    # --- fallback path: D not a multiple of 128 -------------------------------
    Bf, Df, Hf = 16, 96, 64
    xf = jax.random.normal(kx2, (Bf, 2 * Df), dtype=jnp.float32)
    w1f, b1f, w2f, b2f = _make_params(kp2, Df, Hf)
    reff = _reference(xf, w1f, b1f, w2f, b2f, update_q=False)
    outf = jax.block_until_ready(
        symplectic_coupling_forward(xf, w1f, b1f, w2f, b2f, update_q=False))
    assert jnp.allclose(outf, reff, **TOL), "fallback path mismatch"

    # --- fused q-update + p-update pair ---------------------------------------
    w1p, b1p, w2p, b2p = _make_params(kp3, D, H)
    ref_pair = _reference(_reference(x, w1, b1, w2, b2, update_q=True),
                          w1p, b1p, w2p, b2p, update_q=False)
    out_pair = jax.block_until_ready(
        symplectic_coupling_pair_forward(x, (w1, b1, w2, b2),
                                         (w1p, b1p, w2p, b2p),
                                         first_update_q=True))
    assert jnp.allclose(out_pair, ref_pair, **TOL), "fused pair mismatch"

    print("KERNEL_OK")
</pallas_src>

<mosaic_0001>
module attributes {stable_mosaic.version = 11 : i64} {
  func.func @_coupling_kernel(%arg0: i32, %arg1: memref<8x256xf32, #tpu.memory_space<vmem>>, %arg2: memref<128x128xf32, #tpu.memory_space<vmem>>, %arg3: memref<1x128xf32, #tpu.memory_space<vmem>>, %arg4: memref<128x128xf32, #tpu.memory_space<vmem>>, %arg5: memref<1x128xf32, #tpu.memory_space<vmem>>, %arg6: memref<8x128xf32, #tpu.memory_space<vmem>>) attributes {dimension_semantics = [#tpu.dimension_semantics<parallel>], iteration_bounds = array<i64: 3>, scalar_prefetch = 0 : i64, scratch_operands = 0 : i64, tpu.core_type = #tpu.core_type<tc>, window_params = [{transform_indices = @transform_0, window_bounds = array<i64: 8, 256>}, {pipeline_mode = #tpu.pipeline_mode<synchronous>, transform_indices = @transform_1, window_bounds = array<i64: 128, 128>}, {pipeline_mode = #tpu.pipeline_mode<synchronous>, transform_indices = @transform_2, window_bounds = array<i64: 1, 128>}, {pipeline_mode = #tpu.pipeline_mode<synchronous>, transform_indices = @transform_3, window_bounds = array<i64: 128, 128>}, {pipeline_mode = #tpu.pipeline_mode<synchronous>, transform_indices = @transform_4, window_bounds = array<i64: 1, 128>}, {transform_indices = @transform_5, window_bounds = array<i64: 8, 128>}]} {
    %c0 = arith.constant 0 : index
    %c0_0 = arith.constant 0 : index
    %0 = vector.load %arg1[%c0, %c0_0] : memref<8x256xf32, #tpu.memory_space<vmem>>, vector<8x128xf32>
    %c0_1 = arith.constant 0 : index
    %c128 = arith.constant 128 : index
    %1 = vector.load %arg1[%c0_1, %c128] : memref<8x256xf32, #tpu.memory_space<vmem>>, vector<8x128xf32>
    %c0_2 = arith.constant 0 : index
    %c0_3 = arith.constant 0 : index
    %2 = vector.load %arg2[%c0_2, %c0_3] : memref<128x128xf32, #tpu.memory_space<vmem>>, vector<128x128xf32>
    %cst = arith.constant dense<0.000000e+00> : vector<8x128xf32>
    %3 = tpu.matmul %1, %2, %cst {dimension_numbers = #tpu.dot_dimension_numbers<[1], [0], [0], [1], [0, 0, 1, 1], [], []>} : vector<8x128xf32>, vector<128x128xf32>, vector<8x128xf32> -> vector<8x128xf32>
    %c0_4 = arith.constant 0 : index
    %c0_5 = arith.constant 0 : index
    %4 = vector.load %arg3[%c0_4, %c0_5] : memref<1x128xf32, #tpu.memory_space<vmem>>, vector<1x128xf32>
    %5 = vector.broadcast %4 : vector<1x128xf32> to vector<8x128xf32>
    %6 = arith.addf %3, %5 : vector<8x128xf32>
    %7 = math.tanh %6 : vector<8x128xf32>
    %c0_6 = arith.constant 0 : index
    %c0_7 = arith.constant 0 : index
    %8 = vector.load %arg4[%c0_6, %c0_7] : memref<128x128xf32, #tpu.memory_space<vmem>>, vector<128x128xf32>
    %cst_8 = arith.constant dense<0.000000e+00> : vector<8x128xf32>
    %9 = tpu.matmul %7, %8, %cst_8 {dimension_numbers = #tpu.dot_dimension_numbers<[1], [0], [0], [1], [0, 0, 1, 1], [], []>} : vector<8x128xf32>, vector<128x128xf32>, vector<8x128xf32> -> vector<8x128xf32>
    %c0_9 = arith.constant 0 : index
    %c0_10 = arith.constant 0 : index
    %10 = vector.load %arg5[%c0_9, %c0_10] : memref<1x128xf32, #tpu.memory_space<vmem>>, vector<1x128xf32>
    %11 = vector.broadcast %10 : vector<1x128xf32> to vector<8x128xf32>
    %12 = arith.addf %9, %11 : vector<8x128xf32>
    %13 = arith.addf %0, %12 : vector<8x128xf32>
    %c0_11 = arith.constant 0 : index
    %c0_12 = arith.constant 0 : index
    %14 = vector.load %arg6[%c0_11, %c0_12] : memref<8x128xf32, #tpu.memory_space<vmem>>, vector<8x128xf32>
    tpu.vector_store %arg6[%c0_11, %c0_12], %13 {strides = array<i32>} : memref<8x128xf32, #tpu.memory_space<vmem>>, vector<8x128xf32>,
    return
  }
  func.func @transform_0(%arg0: i32) -> (i32, i32) {
    %c0_i32 = arith.constant 0 : i32
    %c0_i32_0 = arith.constant 0 : i32
    return %arg0, %c0_i32 : i32, i32
  }
  func.func @transform_1(%arg0: i32) -> (i32, i32) {
    %c0_i32 = arith.constant 0 : i32
    %c0_i32_0 = arith.constant 0 : i32
    %c0_i32_1 = arith.constant 0 : i32
    return %c0_i32, %c0_i32_0 : i32, i32
  }
  func.func @transform_2(%arg0: i32) -> (i32, i32) {
    %c0_i32 = arith.constant 0 : i32
    %c0_i32_0 = arith.constant 0 : i32
    %c0_i32_1 = arith.constant 0 : i32
    return %c0_i32, %c0_i32_0 : i32, i32
  }
  func.func @transform_3(%arg0: i32) -> (i32, i32) {
    %c0_i32 = arith.constant 0 : i32
    %c0_i32_0 = arith.constant 0 : i32
    %c0_i32_1 = arith.constant 0 : i32
    return %c0_i32, %c0_i32_0 : i32, i32
  }
  func.func @transform_4(%arg0: i32) -> (i32, i32) {
    %c0_i32 = arith.constant 0 : i32
    %c0_i32_0 = arith.constant 0 : i32
    %c0_i32_1 = arith.constant 0 : i32
    return %c0_i32, %c0_i32_0 : i32, i32
  }
  func.func @transform_5(%arg0: i32) -> (i32, i32) {
    %c0_i32 = arith.constant 0 : i32
    %c0_i32_0 = arith.constant 0 : i32
    return %arg0, %c0_i32 : i32, i32
  }
}

</mosaic_0001>

<bundles_post_ra>
// kernel: tpu_custom_call.1
= control target key start
LH: loop header
LB: loop body
LE: loop exit
PB: predicated region body
PF: predicated region fallthrough
CT: control target
= control target key end

     0   :  { %10 = vsyncpa [#allocation3], 0  ;;  %s910_s0 = inlined_call_operand.hbm [shape: f32[24,256], index: 0, kind: input, shape index: {}, may-alias: {0,5}]   ;;  %s911_s1 = inlined_call_operand.hbm [shape: f32[128,128], index: 1, kind: input, shape index: {}]   ;;  %s912_s2 = inlined_call_operand.vmem [shape: f32[1,128], index: 2, kind: input, shape index: {}]   ;;  %s913_s3 = inlined_call_operand.hbm [shape: f32[128,128], index: 3, kind: input, shape index: {}]   ;;  %s914_s4 = inlined_call_operand.vmem [shape: f32[1,128], index: 4, kind: input, shape index: {}]   ;;  %s915_s5 = inlined_call_operand.hbm [shape: f32[24,256], index: 5, kind: output, shape index: {}, may-alias: {0,5}]  }
   0x1   :  { %12 = vsyncpa [#allocation3 + $0x1], 0 }
   0x2   :  { %13 = vsyncpa [#allocation6], 0 }
   0x3   :  { %14 = vsyncpa [#allocation4], 0 }
   0x4   :  { %16 = vsyncpa [#allocation4 + $0x1], 0  ;;  %s756_s18 = smov 0   ;;  %s758_s19 = smov 0  }
   0x5   :  { %s760_s20 = smov 0   ;;  %s762_s21 = smov 0  }
   0x6 LB: > { %s174_s24 = sshll.u32 %s911_s1, 4  ;;  %s780_s25 = sadd.s32 4294967295, %s720_s21   ;;  %s720_s21 = sphi %s762_s21, %s925_s21   ;;  %s716_s20 = sphi %s760_s20, %s924_s20   ;;  %s712_s19 = sphi %s758_s19, %s923_s19   ;;  %s708_s18 = sphi %s756_s18, %s922_s18   ;;  %s175_s24 = int_to_ptr.hbm [resolvable:$true] %s174_s24 }
   0x7   : > { %p468_p0 = scmp.ge.s32.totalorder %s720_s21, 1  ;;  %p43_p1 = scmp.eq.s32.totalorder %s780_s25, 0 }
   0x8   : > { %p163_p2 = scmp.lt.s32.totalorder %s720_s21, 4  ;;  %s722_s27 = smov [#allocation5]  }
   0x9   : > { %s176_s28 = sshll.u32 %s722_s27, 4  ;;  %s191_s6 = sshll.u32 %s913_s3, 4  ;;  %s177_s28 = int_to_ptr.vmem [resolvable:$true] %s176_s28  ;;  %s192_s6 = int_to_ptr.hbm [resolvable:$true] %s191_s6 }
   0xa   : > { %p785_p3 = pnand %p468_p0, %p163_p2  ;;  %s723_s7 = smov [#allocation7]  }
   0xb   : > { %s193_s8 = sshll.u32 %s723_s7, 4  ;;  %s724_s9 = smov 128   ;;  %s194_s8 = int_to_ptr.vmem [resolvable:$true] %s193_s8 }
   0xc   : > { %p499_p4 = pneg %p785_p3  ;;  %s725_s10 = smov 8  }
   0xd   : > { %s467_s11 = sadd.s32 4294967294, %s720_s21   ;;  %s798_s12 = sadd.s32 1, %s720_s21  }
   0xe   : > { %p500_p5 = pnand %p499_p4, %p43_p1  ;;  %s26_s13 = ssub.s32 %s720_s21, %s798_s12 }
   0xf   : > { %s29_s14 = sadd.s32 1, %s716_s20  ;;  %p27_p6 = scmp.eq.s32.totalorder %s26_s13, 0 }
  0x10   : > { %502 = dma.hbm_to_vmem [thread:$0]  (!%p500_p5), %s175_s24, 2048, %s177_s28, [#allocation6], %s724_s9, %s724_s9, %s725_s10  }
  0x11   : > { %505 = dma.hbm_to_vmem [thread:$0]  (!%p500_p5), %s192_s6, 2048, %s194_s8, [#allocation6], %s724_s9, %s724_s9, %s725_s10  }
  0x12   : > { %p36_p7 = scmp.ne.s32.totalorder %s716_s20, %s712_s19  ;;  %p37_p8 = scmp.eq.s32.totalorder %s720_s21, 0 }
  0x13   : > { %p42_p9 = scmp.ne.s32.totalorder %s712_s19, %s708_s18  ;;  %p150_p12 = scmp.eq.s32.totalorder %s780_s25, 2 }
  0x14   : > { %s809_s15 = scalar_select %p27_p6, %s716_s20, %s29_s14  }
  0x15   : > { %p811_p10 = por %p37_p8, %p36_p7  ;;  %p817_p11 = por %p43_p1, %p42_p9 }
  0x16   : > { %p156_p13 = scmp.eq.s32.totalorder %s467_s11, 2  ;;  %p516_p0 = scmp.lt.s32.totalorder %s720_s21, 3 }
  0x17   : > { %s210_s22 = sand.u32 1, %s716_s20   ;;  %p824_p2 = por %p150_p12, %p36_p7 }
  0x18   : > { %p828_p4 = por %p156_p13, %p42_p9  ;;  %s472_s27 = sshll.u32 %s210_s22, 4 }
  0x19   : > { %s485_s28 = sshll.u32 %s720_s21, 4  ;;  %s214_s7 = scalar_lea.vmem [#allocation2], %s472_s27 }
  0x1a   : > { %s219_s6 = scalar_lea.hbm %s910_s0, %s485_s28  ;;  %s223_s8 = sshll.u32 %s214_s7, 4  ;;  %s224_s8 = int_to_ptr.vmem [resolvable:$true] %s223_s8 }
  0x1b   : > { %s221_s9 = sshll.u32 %s219_s6, 4  ;;  %p838_p5 = pnand %p516_p0, %p811_p10  ;;  %s222_s9 = int_to_ptr.hbm [resolvable:$true] %s221_s9 }
  0x1c   : > { %s211_s11 = scalar_lea.sflag [#allocation3], %s210_s22  ;;  %s620_s13 = sshra.s32 %s222_s9, 4  ;;  %s621_s13 = int_to_ptr.hbm [resolvable:$true] %s620_s13 }
  0x1d   : > { %s622_s14 = scalar_lea.hbm %s621_s13, 16  ;;  %p624_p7 = pneg %p838_p5 }
  0x1e   : > { %p623_p6 = scmp.ne.s32.totalorder %s621_s13, %s622_s14  ;;  %s627_s29 = scalar_lea.hbm %s910_s0, 48 }
  0x1f   : > { %p628_p10 = scmp.lt.s32.totalorder %s621_s13, %s910_s0  ;;  %p629_p12 = scmp.lt.s32.totalorder %s627_s29, %s622_s14 }
  0x20   : > { %p625_p8 = pnand %p624_p7, %p623_p6 }
  0x21   : > { %p630_p13 = por %p629_p12, %p628_p10 }
  0x22   : > { %p626_p9 = pneg %p625_p8 }
  0x24   : > { %p631_p0 = pnand %p630_p13, %p626_p9 }
  0x26   : > { %634 = shalt.err (!%p631_p0)
}
  0x27   : > { %509 = dma.hbm_to_vmem [thread:$0]  (!%p838_p5), %s222_s9, 256, %s224_s8, %s211_s11  }
  0x28   : > { %232 = sbr.rel (%p785_p3) target bundleno = 348 (0x15c), region = 40  ;;  %s855_s22 = sand.u32 (!%p785_p3), 1, %s712_s19  }
  0x29   : > { %s476_s6 = sshll.u32 (!%p785_p3), %s855_s22, 4  ;;  %s235_s7 = scalar_lea.sflag (!%p785_p3), [#allocation3], %s855_s22 }
  0x2a   : > { %s859_s27 = scalar_lea.vmem (!%p785_p3), [#allocation2], %s476_s6 }
  0x2d   : > { %695 = dma.done.wait (%p817_p11), %s235_s7, 256  }
  0x2e   : > { %697 = vsyncadd (%p817_p11), %s235_s7, 4294967040 }
  0x2f   : > { %699 = dma.done.wait (%p43_p1), [#allocation6], 4096  }
  0x30   : > { %701 = vsyncadd (%p43_p1), [#allocation6], 4294963200  ;;  %v293_v0 = vld [vmem:[#allocation5 + $0x78] sm:$0xff]  ;;  %v292_v1 = vld [vmem:[#allocation5 + $0x70] sm:$0xff]  ;;  %s479_s8 = sshll.u32 %s855_s22, 3  ;;  %s486_s9 = sshll.u32 %s780_s25, 4 }
  0x31   : > { %298 = vmatpush.msra.mxu0 %v293_v0  ;;  %v291_v2 = vld [vmem:[#allocation5 + $0x68] sm:$0xff]  ;;  %v290_v3 = vld [vmem:[#allocation5 + $0x60] sm:$0xff]  ;;  %v334_v4 = vld [vmem:[#allocation7 + $0x78] sm:$0xff]  ;;  %s373_s28 = scalar_lea.hbm %s915_s5, %s486_s9  ;;  %s275_s29 = scalar_lea.vmem [#allocation8], %s479_s8 }
  0x32   : > { %v289_v5 = vld [vmem:[#allocation5 + $0x58] sm:$0xff]  ;;  %339 = vmatpush.msra.mxu1 %v334_v4  ;;  %v333_v6 = vld [vmem:[#allocation7 + $0x70] sm:$0xff]  ;;  %v332_v7 = vld [vmem:[#allocation7 + $0x68] sm:$0xff]  ;;  %s375_s30 = sshll.u32 %s275_s29, 4  ;;  %s377_s16 = sshll.u32 %s373_s28, 4  ;;  %s376_s30 = int_to_ptr.vmem [resolvable:$true] %s375_s30  ;;  %s378_s16 = int_to_ptr.hbm [resolvable:$true] %s377_s16 }
  0x33   : > { %299 = vmatpush.msra.mxu0 %v292_v1  ;;  %v288_v8 = vld [vmem:[#allocation5 + $0x50] sm:$0xff]  ;;  %v331_v9 = vld [vmem:[#allocation7 + $0x60] sm:$0xff]  ;;  %v287_v10 = vld [vmem:[#allocation5 + $0x48] sm:$0xff]  ;;  %s362_s25 = scalar_lea.sflag [#allocation4], %s855_s22  ;;  %s664_s6 = sshra.s32 %s378_s16, 4  ;;  %s665_s6 = int_to_ptr.hbm [resolvable:$true] %s664_s6 }
  0x34   : > { %340 = vmatpush.msra.mxu1 %v333_v6  ;;  %v330_v11 = vld [vmem:[#allocation7 + $0x58] sm:$0xff]  ;;  %v286_v12 = vld [vmem:[#allocation5 + $0x40] sm:$0xff]  ;;  %v329_v13 = vld [vmem:[#allocation7 + $0x50] sm:$0xff]  ;;  %s666_s7 = scalar_lea.hbm %s665_s6, 8  ;;  %p671_p5 = scmp.lt.s32.totalorder %s665_s6, %s915_s5 }
  0x35   : > { %300 = vmatpush.msra.mxu0 %v291_v2  ;;  %v285_v14 = vld [vmem:[#allocation5 + $0x38] sm:$0xff]  ;;  %v328_v15 = vld [vmem:[#allocation7 + $0x48] sm:$0xff]  ;;  %v284_v16 = vld [vmem:[#allocation5 + $0x30] sm:$0xff]  ;;  %p667_p1 = scmp.ne.s32.totalorder %s665_s6, %s666_s7 }
  0x36   : > { %341 = vmatpush.msra.mxu1 %v332_v7  ;;  %v327_v17 = vld [vmem:[#allocation7 + $0x40] sm:$0xff]  ;;  %v283_v18 = vld [vmem:[#allocation5 + $0x28] sm:$0xff]  ;;  %v326_v19 = vld [vmem:[#allocation7 + $0x38] sm:$0xff] }
  0x37   : > { %301 = vmatpush.msra.mxu0 %v290_v3  ;;  %v282_v20 = vld [vmem:[#allocation5 + $0x20] sm:$0xff]  ;;  %v325_v21 = vld [vmem:[#allocation7 + $0x30] sm:$0xff]  ;;  %v281_v22 = vld [vmem:[#allocation5 + $0x18] sm:$0xff]  ;;  %p668_p3 = pnand %p667_p1, %p824_p2 }
  0x38   : > { %342 = vmatpush.msra.mxu1 %v331_v9  ;;  %v324_v23 = vld [vmem:[#allocation7 + $0x28] sm:$0xff]  ;;  %v280_v24 = vld [vmem:[#allocation5 + $0x10] sm:$0xff]  ;;  %v278_v26 = vld [vmem:[#allocation5] sm:$0xff] }
  0x39   : > { %302 = vmatpush.msra.mxu0 %v289_v5  ;;  %v279_v25 = vld [vmem:[#allocation5 + $0x8] sm:$0xff]  ;;  %v323_v28 = vld [vmem:[#allocation7 + $0x20] sm:$0xff]  ;;  %v322_v29 = vld [vmem:[#allocation7 + $0x18] sm:$0xff]  ;;  %p669_p11 = pneg %p668_p3 }
  0x3a   : > { %343 = vmatpush.msra.mxu1 %v330_v11  ;;  %v277_v27 = vld [vmem:[%s859_s27 + $0x8] sm:$0xff]  ;;  %v321_v30 = vld [vmem:[#allocation7 + $0x10] sm:$0xff]  ;;  %v319_v32 = vld [vmem:[#allocation7] sm:$0xff] }
  0x3b   : > { %303 = vmatpush.msra.mxu0 %v288_v8  ;;  %v320_v31 = vld [vmem:[#allocation7 + $0x8] sm:$0xff]  ;;  %v556_v33 = vld [vmem:[%s912_s2] ss:$0 sm:$0xff] }
  0x3c   : > { %344 = vmatpush.msra.mxu1 %v329_v13  ;;  %v557_v37 = vld [vmem:[%s914_s4] ss:$0 sm:$0xff] }
  0x3d   : > { %304 = vmatpush.msra.mxu0 %v287_v10  ;;  %v276_v38 = vld [vmem:[%s859_s27] sm:$0xff]  ;;  %s670_s27 = scalar_lea.hbm %s915_s5, 48 }
  0x3e   : > { %345 = vmatpush.msra.mxu1 %v328_v15  ;;  %p672_p6 = scmp.lt.s32.totalorder %s670_s27, %s666_s7 }
  0x3f   : > { %305 = vmatpush.msra.mxu0 %v286_v12 }
  0x40   : > { %346 = vmatpush.msra.mxu1 %v327_v17  ;;  %p673_p7 = por %p672_p6, %p671_p5 }
  0x41   : > { %306 = vmatpush.msra.mxu0 %v285_v14 }
  0x42   : > { %347 = vmatpush.msra.mxu1 %v326_v19  ;;  %p674_p8 = pnand %p673_p7, %p669_p11 }
  0x43   : > { %307 = vmatpush.msra.mxu0 %v284_v16 }
  0x44   : > { %348 = vmatpush.msra.mxu1 %v325_v21 }
  0x45   : > { %308 = vmatpush.msra.mxu0 %v283_v18 }
  0x46   : > { %349 = vmatpush.msra.mxu1 %v324_v23 }
  0x47   : > { %309 = vmatpush.msra.mxu0 %v282_v20 }
  0x48   : > { %350 = vmatpush.msra.mxu1 %v323_v28 }
  0x49   : > { %310 = vmatpush.msra.mxu0 %v281_v22 }
  0x4a   : > { %351 = vmatpush.msra.mxu1 %v322_v29 }
  0x4b   : > { %311 = vmatpush.msra.mxu0 %v280_v24 }
  0x4c   : > { %352 = vmatpush.msra.mxu1 %v321_v30 }
  0x4d   : > { %312 = vmatpush.msra.mxu0 %v279_v25 }
  0x4e   : > { %353 = vmatpush.msra.mxu1 %v320_v31 }
  0x4f   : > { %313 = vmatpush.msra.mxu0 %v278_v26 }
  0x50   : > { %314 = vmatmul.f32.vlgmr.msra.gmra.mxu0 %v277_v27  ;;  %354 = vmatpush.msra.mxu1 %v319_v32 }
  0xcd   : > { %v315_v34 = vpop.f32.mrf.mxu0 }
  0xce   : > { %v316_v35 = vadd.f32 %v556_v33, %v315_v34 }
  0xd0   : > { %558 = vtanh.f32 %v316_v35 }
  0xd6   : > { %v559_v36 = vpop.eup %558 }
  0xd7   : > { %355 = vmatmul.f32.vlgmr.msra.gmra.mxu1 %v559_v36 }
 0x154   : > { %v356_v39 = vpop.f32.mrf.mxu1 }
 0x155   : > { %v357_v40 = vadd.f32 %v557_v37, %v356_v39 }
 0x157   : > { %v359_v41 = vadd.f32 %v357_v40, %v276_v38 }
 0x159   : > { %360 = vst [vmem:[%s275_s29] sm:$0xff] %v359_v41 }
 0x15a   : > { %677 = shalt.err (!%p674_p8)
}
 0x15b   : > { %497 = dma.vmem_to_hbm [thread:$0]  (%p824_p2), %s376_s30, 128, %s378_s16, %s362_s25  }
 0x15c PF: > { %p519_p9 = scmp.ge.s32.totalorder %s720_s21, 2  ;;  %s389_s22 = sand.u32 1, %s708_s18  }
 0x15d   : > { %s390_s10 = scalar_lea.sflag [#allocation4], %s389_s22 }
 0x15e   : > { %p511_p10 = pnand %p519_p9, %p828_p4 }
 0x160   : > { %p512_p12 = pneg %p511_p10 }
 0x162   : > { %703 = dma.done.wait (%p512_p12), %s390_s10, 128  }
 0x163   : > { %705 = vsyncadd (%p512_p12), %s390_s10, 4294967168  ;;  %p19_p13 = scmp.ge.s32.totalorder %s798_s12, 5   ;;  %s922_s18 = smov %s712_s19 }
 0x164   : > { %s923_s19 = smov %s716_s20  ;;  %s924_s20 = smov %s809_s15 }
 0x165   : > { %s925_s21 = smov %s798_s12  ;;  %21 = sbr.rel (!%p19_p13) target bundleno = 6 (0x6), region = 93 }
 0x16a   :  { %396 = vsyncpa [#allocation3], 1 }
 0x16b   :  { %398 = vsyncpa [#allocation3 + $0x1], 1 }
 0x16c   :  { %399 = vsyncpa [#allocation6], 1 }
 0x16d   :  { %400 = vsyncpa [#allocation4], 1 }
 0x16e   :  { %402 = vsyncpa [#allocation4 + $0x1], 1 }

</bundles_post_ra>
